<compile_context>
chip_gen: v6e
topology: v6e:2x2x1
jax: 0.10.0
libtpu: 0.0.40
codegen_flags: <defaults>
</compile_context>

<pallas_src>
import functools

import jax
import jax.numpy as jnp
from jax.experimental import pallas as pl
from jax.experimental.pallas import tpu as pltpu


def _round_up(v, m):
    return ((v + m - 1) // m) * m


def _fused_mlp_kernel(x_ref, w0_ref, b0_ref, w1_ref, b1_ref,
                      w2_ref, b2_ref, w3_ref, b3_ref, o_ref):
    """Whole 4-layer MLP for one M-tile.

    Weights (bf16) / biases (f32) use constant index_maps, so Pallas DMAs them
    into VMEM once and re-uses them across grid steps. Activations are cast to
    bf16 right before each MXU matmul; accumulation, bias-add and ReLU are f32.
    """
    h = jnp.dot(x_ref[...].astype(jnp.bfloat16), w0_ref[...],
                preferred_element_type=jnp.float32)
    h = jnp.maximum(h + b0_ref[...], 0.0)
    h = jnp.dot(h.astype(jnp.bfloat16), w1_ref[...],
                preferred_element_type=jnp.float32)
    h = jnp.maximum(h + b1_ref[...], 0.0)
    h = jnp.dot(h.astype(jnp.bfloat16), w2_ref[...],
                preferred_element_type=jnp.float32)
    h = jnp.maximum(h + b2_ref[...], 0.0)
    out = jnp.dot(h.astype(jnp.bfloat16), w3_ref[...],
                  preferred_element_type=jnp.float32) + b3_ref[...]
    o_ref[...] = out.astype(o_ref.dtype)


def prepare_params(params):
    """One-time parameter prep (do NOT call per forward).

    Pads to TPU-friendly shapes, casts weights to bf16, reshapes biases to
    (1, n) f32 rows. `params` is [(w, b), ...] with w of shape
    (in_features, out_features). Returns (prepped_pytree, num_classes).
    """
    (w0, b0), (w1, b1), (w2, b2), (w3, b3) = params
    in_dim, hidden = w0.shape
    num_classes = w3.shape[1]
    assert hidden % 128 == 0, "hidden width must be a multiple of 128"

    k_pad = _round_up(in_dim, 128)       # lane dim of the first matmul
    n_pad = _round_up(num_classes, 128)  # lane-dense output stores

    w0_p = jnp.zeros((k_pad, hidden), jnp.bfloat16).at[:in_dim, :].set(
        w0.astype(jnp.bfloat16))
    w1_p = w1.astype(jnp.bfloat16)
    w2_p = w2.astype(jnp.bfloat16)
    w3_p = jnp.zeros((hidden, n_pad), jnp.bfloat16).at[:, :num_classes].set(
        w3.astype(jnp.bfloat16))

    b0_p = b0.reshape(1, hidden).astype(jnp.float32)
    b1_p = b1.reshape(1, hidden).astype(jnp.float32)
    b2_p = b2.reshape(1, hidden).astype(jnp.float32)
    b3_p = jnp.zeros((1, n_pad), jnp.float32).at[0, :num_classes].set(
        b3.astype(jnp.float32))

    prepped = (w0_p, b0_p, w1_p, b1_p, w2_p, b2_p, w3_p, b3_p)
    return prepped, num_classes


@functools.partial(jax.jit, static_argnames=("num_classes", "tm"))
def neuron_forward(x_nchw, prepped, *, num_classes, tm=512):
    """Forward pass of the Neuron module. x_nchw: (B, C, H, W) float32."""
    w0, b0, w1, b1, w2, b2, w3, b3 = prepped
    B = x_nchw.shape[0]
    x = x_nchw.reshape(B, -1).astype(jnp.float32)  # nn.Flatten (row-major)
    in_dim = x.shape[1]
    k_pad, hidden = w0.shape
    n_pad = w3.shape[1]
    assert in_dim <= k_pad

    # ---- M tiling: pad the batch to a tile multiple (zeros don't change the
    # math and get sliced off).  When one tile would cover the whole batch,
    # split into >=2 "parallel" grid steps so v7x's 2nd TensorCore has work.
    m_rows = _round_up(max(B, 8), 8)      # f32 sublane is 8
    tm = max(8, min(tm, m_rows))
    if m_rows // tm < 2 and m_rows >= 16:
        tm = _round_up(pl.cdiv(m_rows, 2), 8)
    m_pad = _round_up(m_rows, tm)
    grid = (m_pad // tm,)

    x_p = jnp.zeros((m_pad, k_pad), jnp.float32).at[:B, :in_dim].set(x)

    const = lambda i: (0, 0)   # weights / biases: same block every grid step
    row = lambda i: (i, 0)     # x / out: tiled over the (padded) batch axis

    # Advisory cost estimate so XLA schedules surrounding ops sensibly.
    weight_bytes = (w0.size + w1.size + w2.size + w3.size) * 2   # bf16
    bias_bytes = (b0.size + b1.size + b2.size + b3.size) * 4     # f32
    flops = 2 * m_pad * (k_pad * hidden + 2 * hidden * hidden + hidden * n_pad)
    bytes_accessed = (x_p.size * 4) + weight_bytes + bias_bytes + (m_pad * n_pad * 4)
    cost = pl.CostEstimate(flops=flops, transcendentals=0,
                           bytes_accessed=bytes_accessed)

    out_p = pl.pallas_call(
        _fused_mlp_kernel,
        out_shape=jax.ShapeDtypeStruct((m_pad, n_pad), jnp.float32),
        grid_spec=pltpu.PrefetchScalarGridSpec(
            num_scalar_prefetch=0,
            grid=grid,
            in_specs=[
                pl.BlockSpec((tm, k_pad), row),         # x tile (f32)
                pl.BlockSpec((k_pad, hidden), const),   # w0 (bf16, K padded)
                pl.BlockSpec((1, hidden), const),       # b0 (f32)
                pl.BlockSpec((hidden, hidden), const),  # w1 (bf16)
                pl.BlockSpec((1, hidden), const),       # b1 (f32)
                pl.BlockSpec((hidden, hidden), const),  # w2 (bf16)
                pl.BlockSpec((1, hidden), const),       # b2 (f32)
                pl.BlockSpec((hidden, n_pad), const),   # w3 (bf16, N padded)
                pl.BlockSpec((1, n_pad), const),        # b3 (f32, padded)
            ],
            out_specs=pl.BlockSpec((tm, n_pad), row),
        ),
        compiler_params=pltpu.CompilerParams(
            dimension_semantics=("parallel",),
            vmem_limit_bytes=64 * 1024 * 1024,   # budget for v7x's 64 MiB VMEM
        ),
        cost_estimate=cost,
    )(x_p, w0, b0, w1, b1, w2, b2, w3, b3)

    # Slice off the batch / class padding.
    return out_p[:B, :num_classes]


def init_params(key, in_dim, hidden, num_classes):
    """PyTorch-style uniform(-1/sqrt(fan_in), 1/sqrt(fan_in)) init.

    Weights stored as (in_features, out_features).
    """
    dims = [(in_dim, hidden), (hidden, hidden), (hidden, hidden),
            (hidden, num_classes)]
    params = []
    for fan_in, fan_out in dims:
        key, kw, kb = jax.random.split(key, 3)
        bound = 1.0 / jnp.sqrt(jnp.float32(fan_in))
        w = jax.random.uniform(kw, (fan_in, fan_out), jnp.float32, -bound, bound)
        b = jax.random.uniform(kb, (fan_out,), jnp.float32, -bound, bound)
        params.append((w, b))
    return params


if __name__ == "__main__":
    # Small shapes consistent with the module's structure:
    #   batch=2, channels=3, spatial=16x16, hidden=128, num_classes=10
    B, C, H, W = 2, 3, 16, 16
    hidden = 128
    num_classes = 10
    in_dim = C * H * W  # 768

    key = jax.random.PRNGKey(0)
    key, kx = jax.random.split(key)
    x = jax.random.normal(kx, (B, C, H, W), jnp.float32)

    params = init_params(key, in_dim, hidden, num_classes)
    prepped, n_cls = prepare_params(params)   # one-time weight prep (bf16 + pad)

    logits = neuron_forward(x, prepped, num_classes=n_cls)
    logits = jax.block_until_ready(logits)

    assert logits.shape == (B, num_classes)
    assert logits.dtype == jnp.float32

    # Sanity check against a pure-JAX reference that mimics the kernel's
    # bf16-matmul / f32-accumulate numerics.
    def ref_forward(x_nchw, ps):
        h = x_nchw.reshape(x_nchw.shape[0], -1)
        for i, (w, b) in enumerate(ps):
            h = jnp.dot(h.astype(jnp.bfloat16), w.astype(jnp.bfloat16),
                        preferred_element_type=jnp.float32) + b
            if i < len(ps) - 1:
                h = jnp.maximum(h, 0.0)
        return h

    ref = ref_forward(x, params)
    max_err = float(jnp.max(jnp.abs(logits - ref)))
    assert jnp.allclose(logits, ref, atol=2e-2, rtol=2e-2), max_err

    print("KERNEL_OK")
</pallas_src>

<mosaic_0001>
module attributes {stable_mosaic.version = 11 : i64} {
  func.func @_fused_mlp_kernel(%arg0: i32, %arg1: memref<8x768xf32, #tpu.memory_space<vmem>>, %arg2: memref<768x128xbf16, #tpu.memory_space<vmem>>, %arg3: memref<1x128xf32, #tpu.memory_space<vmem>>, %arg4: memref<128x128xbf16, #tpu.memory_space<vmem>>, %arg5: memref<1x128xf32, #tpu.memory_space<vmem>>, %arg6: memref<128x128xbf16, #tpu.memory_space<vmem>>, %arg7: memref<1x128xf32, #tpu.memory_space<vmem>>, %arg8: memref<128x128xbf16, #tpu.memory_space<vmem>>, %arg9: memref<1x128xf32, #tpu.memory_space<vmem>>, %arg10: memref<8x128xf32, #tpu.memory_space<vmem>>) attributes {dimension_semantics = [#tpu.dimension_semantics<parallel>], iteration_bounds = array<i64: 1>, scalar_prefetch = 0 : i64, scratch_operands = 0 : i64, tpu.core_type = #tpu.core_type<tc>, window_params = [{transform_indices = @transform_0, window_bounds = array<i64: 8, 768>}, {pipeline_mode = #tpu.pipeline_mode<synchronous>, transform_indices = @transform_1, window_bounds = array<i64: 768, 128>}, {pipeline_mode = #tpu.pipeline_mode<synchronous>, transform_indices = @transform_2, window_bounds = array<i64: 1, 128>}, {pipeline_mode = #tpu.pipeline_mode<synchronous>, transform_indices = @transform_3, window_bounds = array<i64: 128, 128>}, {pipeline_mode = #tpu.pipeline_mode<synchronous>, transform_indices = @transform_4, window_bounds = array<i64: 1, 128>}, {pipeline_mode = #tpu.pipeline_mode<synchronous>, transform_indices = @transform_5, window_bounds = array<i64: 128, 128>}, {pipeline_mode = #tpu.pipeline_mode<synchronous>, transform_indices = @transform_6, window_bounds = array<i64: 1, 128>}, {pipeline_mode = #tpu.pipeline_mode<synchronous>, transform_indices = @transform_7, window_bounds = array<i64: 128, 128>}, {pipeline_mode = #tpu.pipeline_mode<synchronous>, transform_indices = @transform_8, window_bounds = array<i64: 1, 128>}, {transform_indices = @transform_9, window_bounds = array<i64: 8, 128>}]} {
    %c0 = arith.constant 0 : index
    %c0_0 = arith.constant 0 : index
    %0 = vector.load %arg1[%c0, %c0_0] : memref<8x768xf32, #tpu.memory_space<vmem>>, vector<8x768xf32>
    %1 = arith.truncf %0 : vector<8x768xf32> to vector<8x768xbf16>
    %c0_1 = arith.constant 0 : index
    %c0_2 = arith.constant 0 : index
    %2 = vector.load %arg2[%c0_1, %c0_2] : memref<768x128xbf16, #tpu.memory_space<vmem>>, vector<768x128xbf16>
    %cst = arith.constant dense<0.000000e+00> : vector<8x128xf32>
    %3 = tpu.matmul %1, %2, %cst {dimension_numbers = #tpu.dot_dimension_numbers<[1], [0], [0], [1], [0, 0, 1, 1], [], []>} : vector<8x768xbf16>, vector<768x128xbf16>, vector<8x128xf32> -> vector<8x128xf32>
    %c0_3 = arith.constant 0 : index
    %c0_4 = arith.constant 0 : index
    %4 = vector.load %arg3[%c0_3, %c0_4] : memref<1x128xf32, #tpu.memory_space<vmem>>, vector<1x128xf32>
    %5 = vector.broadcast %4 : vector<1x128xf32> to vector<8x128xf32>
    %6 = arith.addf %3, %5 : vector<8x128xf32>
    %cst_5 = arith.constant 0.000000e+00 : f32
    %7 = vector.broadcast %cst_5 : f32 to vector<8x128xf32>
    %8 = arith.maximumf %6, %7 : vector<8x128xf32>
    %9 = arith.truncf %8 : vector<8x128xf32> to vector<8x128xbf16>
    %c0_6 = arith.constant 0 : index
    %c0_7 = arith.constant 0 : index
    %10 = vector.load %arg4[%c0_6, %c0_7] : memref<128x128xbf16, #tpu.memory_space<vmem>>, vector<128x128xbf16>
    %cst_8 = arith.constant dense<0.000000e+00> : vector<8x128xf32>
    %11 = tpu.matmul %9, %10, %cst_8 {dimension_numbers = #tpu.dot_dimension_numbers<[1], [0], [0], [1], [0, 0, 1, 1], [], []>} : vector<8x128xbf16>, vector<128x128xbf16>, vector<8x128xf32> -> vector<8x128xf32>
    %c0_9 = arith.constant 0 : index
    %c0_10 = arith.constant 0 : index
    %12 = vector.load %arg5[%c0_9, %c0_10] : memref<1x128xf32, #tpu.memory_space<vmem>>, vector<1x128xf32>
    %13 = vector.broadcast %12 : vector<1x128xf32> to vector<8x128xf32>
    %14 = arith.addf %11, %13 : vector<8x128xf32>
    %cst_11 = arith.constant 0.000000e+00 : f32
    %15 = vector.broadcast %cst_11 : f32 to vector<8x128xf32>
    %16 = arith.maximumf %14, %15 : vector<8x128xf32>
    %17 = arith.truncf %16 : vector<8x128xf32> to vector<8x128xbf16>
    %c0_12 = arith.constant 0 : index
    %c0_13 = arith.constant 0 : index
    %18 = vector.load %arg6[%c0_12, %c0_13] : memref<128x128xbf16, #tpu.memory_space<vmem>>, vector<128x128xbf16>
    %cst_14 = arith.constant dense<0.000000e+00> : vector<8x128xf32>
    %19 = tpu.matmul %17, %18, %cst_14 {dimension_numbers = #tpu.dot_dimension_numbers<[1], [0], [0], [1], [0, 0, 1, 1], [], []>} : vector<8x128xbf16>, vector<128x128xbf16>, vector<8x128xf32> -> vector<8x128xf32>
    %c0_15 = arith.constant 0 : index
    %c0_16 = arith.constant 0 : index
    %20 = vector.load %arg7[%c0_15, %c0_16] : memref<1x128xf32, #tpu.memory_space<vmem>>, vector<1x128xf32>
    %21 = vector.broadcast %20 : vector<1x128xf32> to vector<8x128xf32>
    %22 = arith.addf %19, %21 : vector<8x128xf32>
    %cst_17 = arith.constant 0.000000e+00 : f32
    %23 = vector.broadcast %cst_17 : f32 to vector<8x128xf32>
    %24 = arith.maximumf %22, %23 : vector<8x128xf32>
    %25 = arith.truncf %24 : vector<8x128xf32> to vector<8x128xbf16>
    %c0_18 = arith.constant 0 : index
    %c0_19 = arith.constant 0 : index
    %26 = vector.load %arg8[%c0_18, %c0_19] : memref<128x128xbf16, #tpu.memory_space<vmem>>, vector<128x128xbf16>
    %cst_20 = arith.constant dense<0.000000e+00> : vector<8x128xf32>
    %27 = tpu.matmul %25, %26, %cst_20 {dimension_numbers = #tpu.dot_dimension_numbers<[1], [0], [0], [1], [0, 0, 1, 1], [], []>} : vector<8x128xbf16>, vector<128x128xbf16>, vector<8x128xf32> -> vector<8x128xf32>
    %c0_21 = arith.constant 0 : index
    %c0_22 = arith.constant 0 : index
    %28 = vector.load %arg9[%c0_21, %c0_22] : memref<1x128xf32, #tpu.memory_space<vmem>>, vector<1x128xf32>
    %29 = vector.broadcast %28 : vector<1x128xf32> to vector<8x128xf32>
    %30 = arith.addf %27, %29 : vector<8x128xf32>
    %c0_23 = arith.constant 0 : index
    %c0_24 = arith.constant 0 : index
    %31 = vector.load %arg10[%c0_23, %c0_24] : memref<8x128xf32, #tpu.memory_space<vmem>>, vector<8x128xf32>
    tpu.vector_store %arg10[%c0_23, %c0_24], %30 {strides = array<i32>} : memref<8x128xf32, #tpu.memory_space<vmem>>, vector<8x128xf32>,
    return
  }
  func.func @transform_0(%arg0: i32) -> (i32, i32) {
    %c0_i32 = arith.constant 0 : i32
    %c0_i32_0 = arith.constant 0 : i32
    return %arg0, %c0_i32 : i32, i32
  }
  func.func @transform_1(%arg0: i32) -> (i32, i32) {
    %c0_i32 = arith.constant 0 : i32
    %c0_i32_0 = arith.constant 0 : i32
    %c0_i32_1 = arith.constant 0 : i32
    return %c0_i32, %c0_i32_0 : i32, i32
  }
  func.func @transform_2(%arg0: i32) -> (i32, i32) {
    %c0_i32 = arith.constant 0 : i32
    %c0_i32_0 = arith.constant 0 : i32
    %c0_i32_1 = arith.constant 0 : i32
    return %c0_i32, %c0_i32_0 : i32, i32
  }
  func.func @transform_3(%arg0: i32) -> (i32, i32) {
    %c0_i32 = arith.constant 0 : i32
    %c0_i32_0 = arith.constant 0 : i32
    %c0_i32_1 = arith.constant 0 : i32
    return %c0_i32, %c0_i32_0 : i32, i32
  }
  func.func @transform_4(%arg0: i32) -> (i32, i32) {
    %c0_i32 = arith.constant 0 : i32
    %c0_i32_0 = arith.constant 0 : i32
    %c0_i32_1 = arith.constant 0 : i32
    return %c0_i32, %c0_i32_0 : i32, i32
  }
  func.func @transform_5(%arg0: i32) -> (i32, i32) {
    %c0_i32 = arith.constant 0 : i32
    %c0_i32_0 = arith.constant 0 : i32
    %c0_i32_1 = arith.constant 0 : i32
    return %c0_i32, %c0_i32_0 : i32, i32
  }
  func.func @transform_6(%arg0: i32) -> (i32, i32) {
    %c0_i32 = arith.constant 0 : i32
    %c0_i32_0 = arith.constant 0 : i32
    %c0_i32_1 = arith.constant 0 : i32
    return %c0_i32, %c0_i32_0 : i32, i32
  }
  func.func @transform_7(%arg0: i32) -> (i32, i32) {
    %c0_i32 = arith.constant 0 : i32
    %c0_i32_0 = arith.constant 0 : i32
    %c0_i32_1 = arith.constant 0 : i32
    return %c0_i32, %c0_i32_0 : i32, i32
  }
  func.func @transform_8(%arg0: i32) -> (i32, i32) {
    %c0_i32 = arith.constant 0 : i32
    %c0_i32_0 = arith.constant 0 : i32
    %c0_i32_1 = arith.constant 0 : i32
    return %c0_i32, %c0_i32_0 : i32, i32
  }
  func.func @transform_9(%arg0: i32) -> (i32, i32) {
    %c0_i32 = arith.constant 0 : i32
    %c0_i32_0 = arith.constant 0 : i32
    return %arg0, %c0_i32 : i32, i32
  }
}

</mosaic_0001>

<bundles_post_ra>
// kernel: neuron_forward.1
= control target key start
LH: loop header
LB: loop body
LE: loop exit
PB: predicated region body
PF: predicated region fallthrough
CT: control target
= control target key end

     0   :  { %14 = vsyncpa [#allocation3], 0  ;;  %s1454_s0 = inlined_call_operand.vmem [shape: f32[8,768], index: 0, kind: input, shape index: {}]   ;;  %s1455_s1 = inlined_call_operand.hbm [shape: bf16[768,128], index: 1, kind: input, shape index: {}]   ;;  %s1456_s2 = inlined_call_operand.vmem [shape: f32[1,128], index: 2, kind: input, shape index: {}]   ;;  %s1457_s3 = inlined_call_operand.vmem [shape: bf16[128,128], index: 3, kind: input, shape index: {}]   ;;  %s1458_s4 = inlined_call_operand.vmem [shape: f32[1,128], index: 4, kind: input, shape index: {}]   ;;  %s1459_s5 = inlined_call_operand.vmem [shape: bf16[128,128], index: 5, kind: input, shape index: {}]   ;;  %s1460_s6 = inlined_call_operand.vmem [shape: f32[1,128], index: 6, kind: input, shape index: {}]   ;;  %s1461_s7 = inlined_call_operand.hbm [shape: bf16[128,128], index: 7, kind: input, shape index: {}]   ;;  %s1462_s8 = inlined_call_operand.vmem [shape: f32[1,128], index: 8, kind: input, shape index: {}]   ;;  %s1463_s9 = inlined_call_operand.vmem [shape: f32[8,128], index: 9, kind: output, shape index: {}]  }
   0x1   :  { %15 = vsyncpa [#allocation5], 0  ;;  %s1281_s30 = smov [#allocation2]  }
   0x2   :  { %s23_s10 = sshll.u32 %s1281_s30, 4  ;;  %s24_s10 = int_to_ptr.vmem [resolvable:$true] %s23_s10 }
   0x3   :  { %s1245_s11 = scalar_lea.vmem %s24_s10, 6144  ;;  %p1250_p1 = scmp.lt.s32.totalorder %s24_s10, %s24_s10 }
   0x4   :  { %p1246_p0 = scmp.ne.s32.totalorder %s24_s10, %s1245_s11  ;;  %p1251_p2 = scmp.lt.s32.totalorder %s1245_s11, %s1245_s11 }
   0x6   :  { %p1252_p3 = por %p1251_p2, %p1250_p1 }
   0x8   :  { %p1253_p4 = pnand %p1252_p3, %p1246_p0 }
   0xa   :  { %1256 = shalt.err (!%p1253_p4)
}
   0xb   :  { %s1282_s12 = smov 64   ;;  %s1283_s13 = smov 4  }
   0xc   :  { %29 = dma.hbm_to_vmem [thread:$0]  %s1455_s1, 6144, %s24_s10, [#allocation3], %s1282_s12, %s1282_s12, %s1283_s13  }
   0xd   :  { %s1284_s16 = smov [#allocation4]  }
   0xe   :  { %s45_s17 = sshll.u32 %s1284_s16, 4  ;;  %s46_s17 = int_to_ptr.vmem [resolvable:$true] %s45_s17 }
   0xf   :  { %s1265_s18 = scalar_lea.vmem %s46_s17, 1024  ;;  %p1270_p6 = scmp.lt.s32.totalorder %s46_s17, %s46_s17 }
  0x10   :  { %p1266_p5 = scmp.ne.s32.totalorder %s46_s17, %s1265_s18  ;;  %p1271_p7 = scmp.lt.s32.totalorder %s1265_s18, %s1265_s18 }
  0x12   :  { %p1272_p8 = por %p1271_p7, %p1270_p6 }
  0x14   :  { %p1273_p9 = pnand %p1272_p8, %p1266_p5 }
  0x16   :  { %1276 = shalt.err (!%p1273_p9)
}
  0x17   :  { %51 = dma.hbm_to_vmem [thread:$0]  %s1461_s7, 1024, %s46_s17, [#allocation5], %s1282_s12, %s1282_s12, %s1283_s13  }
  0x18   :  { %1277 = dma.done.wait [#allocation3], 6144  }
  0x19   :  { %1278 = vsyncadd [#allocation3], 4294961152 }
  0x1a   :  { %1279 = dma.done.wait [#allocation5], 1024  }
  0x1b   :  { %1280 = vsyncadd [#allocation5], 4294966272  ;;  %v1165_v0 = vld [vmem:[#allocation2 + $0x78] sm:$0xff]   ;;  %v1169_v4 = vld [vmem:[#allocation2 + $0x70] sm:$0xff]   ;;  %v1285_v61 = vmov 0.0   ;;  %vm1286_vm0 = vmmov 0  }
  0x1c   :  { %v1166_v1 = vld [vmem:[#allocation2 + $0x38] sm:$0xff]   ;;  %1006 = vmatprep.subr.bf16.mxu0 %v1165_v0  ;;  %v1170_v5 = vld [vmem:[#allocation2 + $0x30] sm:$0xff]   ;;  %v1173_v8 = vld [vmem:[#allocation2 + $0x68] sm:$0xff]  }
  0x1d   :  { %v1167_v2 = vld [vmem:[#allocation2 + $0xf8] sm:$0xff]   ;;  %1007 = vmatpush3.bf16.msra.mxu0 %v1166_v1  ;;  %v1171_v6 = vld [vmem:[#allocation2 + $0xf0] sm:$0xff]   ;;  %v1174_v9 = vld [vmem:[#allocation2 + $0x28] sm:$0xff]  }
  0x1e   :  { %v1168_v3 = vld [vmem:[#allocation2 + $0xb8] sm:$0xff]   ;;  %1028 = vmatprep.subr.bf16.mxu1 %v1167_v2  ;;  %1008 = vmatprep.subr.bf16.mxu0 %v1169_v4  ;;  %v1172_v7 = vld [vmem:[#allocation2 + $0xb0] sm:$0xff]   ;;  %v1175_v10 = vld [vmem:[#allocation2 + $0xe8] sm:$0xff]  }
  0x1f   :  { %1029 = vmatpush3.bf16.msra.mxu1 %v1168_v3  ;;  %v1176_v11 = vld [vmem:[#allocation2 + $0xa8] sm:$0xff]   ;;  %v1177_v12 = vld [vmem:[#allocation2 + $0x60] sm:$0xff]   ;;  %v1181_v16 = vld [vmem:[#allocation2 + $0x58] sm:$0xff]  }
  0x20   :  { %1030 = vmatprep.subr.bf16.mxu1 %v1171_v6  ;;  %v1178_v13 = vld [vmem:[#allocation2 + $0x20] sm:$0xff]   ;;  %v1182_v17 = vld [vmem:[#allocation2 + $0x18] sm:$0xff]   ;;  %v1185_v20 = vld [vmem:[#allocation2 + $0x50] sm:$0xff]  }
  0x21   :  { %1009 = vmatpush3.bf16.msra.mxu0 %v1170_v5  ;;  %v1179_v14 = vld [vmem:[#allocation2 + $0xe0] sm:$0xff]   ;;  %v1183_v18 = vld [vmem:[#allocation2 + $0xd8] sm:$0xff]   ;;  %v1186_v21 = vld [vmem:[#allocation2 + $0x10] sm:$0xff]  }
  0x22   :  { %1010 = vmatprep.subr.bf16.mxu0 %v1173_v8  ;;  %v1180_v15 = vld [vmem:[#allocation2 + $0xa0] sm:$0xff]   ;;  %v1184_v19 = vld [vmem:[#allocation2 + $0x98] sm:$0xff]   ;;  %v1187_v22 = vld [vmem:[#allocation2 + $0xd0] sm:$0xff]  }
  0x23   :  { %1031 = vmatpush3.bf16.msra.mxu1 %v1172_v7  ;;  %v1188_v23 = vld [vmem:[#allocation2 + $0x90] sm:$0xff]   ;;  %v1189_v24 = vld [vmem:[#allocation2 + $0x48] sm:$0xff]   ;;  %v1193_v28 = vld [vmem:[#allocation2 + $0x40] sm:$0xff]  }
  0x24   :  { %1032 = vmatprep.subr.bf16.mxu1 %v1175_v10  ;;  %v1190_v25 = vld [vmem:[#allocation2 + $0x8] sm:$0xff]   ;;  %v1194_v29 = vld [vmem:[#allocation2] sm:$0xff]   ;;  %v1197_v36 = vld [vmem:[#allocation2 + $0x178] sm:$0xff]  }
  0x25   :  { %1011 = vmatpush3.bf16.msra.mxu0 %v1174_v9  ;;  %v1191_v26 = vld [vmem:[#allocation2 + $0xc8] sm:$0xff]   ;;  %v1195_v30 = vld [vmem:[#allocation2 + $0xc0] sm:$0xff]   ;;  %v64_v37 = vld [vmem:[%s1454_s0 + $0x18] sm:$0xff] }
  0x26   :  { %1012 = vmatprep.subr.bf16.mxu0 %v1177_v12  ;;  %v1192_v27 = vld [vmem:[#allocation2 + $0x88] sm:$0xff]   ;;  %v1196_v33 = vld [vmem:[#allocation2 + $0x80] sm:$0xff]   ;;  %v70_v38 = vpack.c.bf16 %v64_v37, %v64_v37  ;;  %v1198_v39 = vld [vmem:[#allocation2 + $0x138] sm:$0xff]  }
  0x27   :  { %1033 = vmatpush3.bf16.msra.mxu1 %v1176_v11  ;;  %v62_v31 = vld [vmem:[%s1454_s0 + $0x8] sm:$0xff]  ;;  %v61_v34 = vld [vmem:[%s1454_s0] sm:$0xff]  ;;  %v63_v40 = vld [vmem:[%s1454_s0 + $0x10] sm:$0xff] }
  0x28   :  { %1034 = vmatprep.subr.bf16.mxu1 %v1179_v14  ;;  %v68_v32 = vpack.c.bf16 %v62_v31, %v62_v31  ;;  %v67_v35 = vpack.c.bf16 %v61_v34, %v61_v34  ;;  %536 = vmatprep.mubr.bf16.mxu1 %v70_v38  ;;  %v69_v41 = vpack.c.bf16 %v63_v40, %v63_v40  ;;  %v1199_v42 = vld [vmem:[#allocation2 + $0x170] sm:$0xff]   ;;  %v1201_v44 = vld [vmem:[#allocation2 + $0x168] sm:$0xff]   ;;  %v1203_v46 = vld [vmem:[#allocation2 + $0x160] sm:$0xff]  }
  0x29   :  { %1013 = vmatpush3.bf16.msra.mxu0 %v1178_v13  ;;  %v1200_v43 = vld [vmem:[#allocation2 + $0x130] sm:$0xff]   ;;  %v1202_v45 = vld [vmem:[#allocation2 + $0x128] sm:$0xff]   ;;  %v1204_v47 = vld [vmem:[#allocation2 + $0x120] sm:$0xff]  }
  0x2a   :  { %1014 = vmatprep.subr.bf16.mxu0 %v1181_v16  ;;  %496 = vmatprep.mubr.bf16.mxu0 %v68_v32  ;;  %v1205_v48 = vld [vmem:[#allocation2 + $0x158] sm:$0xff]   ;;  %v1207_v50 = vld [vmem:[#allocation2 + $0x150] sm:$0xff]   ;;  %v66_v51 = vld [vmem:[%s1454_s0 + $0x28] sm:$0xff] }
  0x2b   :  { %1035 = vmatpush3.bf16.msra.mxu1 %v1180_v15  ;;  %v1206_v49 = vld [vmem:[#allocation2 + $0x118] sm:$0xff]   ;;  %v1208_v52 = vld [vmem:[#allocation2 + $0x110] sm:$0xff]   ;;  %v72_v53 = vpack.c.bf16 %v66_v51, %v66_v51  ;;  %v1209_v54 = vld [vmem:[#allocation2 + $0x148] sm:$0xff]  }
  0x2c   :  { %1036 = vmatprep.subr.bf16.mxu1 %v1183_v18  ;;  %v1210_v55 = vld [vmem:[#allocation2 + $0x108] sm:$0xff]   ;;  %v1211_v56 = vld [vmem:[#allocation2 + $0x140] sm:$0xff]   ;;  %v1213_v60 = vld [vmem:[%s1457_s3 + $0x38] sm:$0xff]  }
  0x2d   :  { %1015 = vmatpush3.bf16.msra.mxu0 %v1182_v17  ;;  %v1212_v57 = vld [vmem:[#allocation2 + $0x100] sm:$0xff]   ;;  %v1214_v62 = vld [vmem:[%s1457_s3 + $0x30] sm:$0xff]   ;;  %v1215_v63 = vld [vmem:[%s1457_s3 + $0x28] sm:$0xff]  }
  0x2e   :  { %1016 = vmatprep.subr.bf16.mxu0 %v1185_v20  ;;  %v65_v58 = vld [vmem:[%s1454_s0 + $0x20] sm:$0xff]  ;;  %v1217_v1 = vld [vmem:[%s1457_s3 + $0x18] sm:$0xff]   ;;  %v1218_v2 = vld [vmem:[%s1457_s3 + $0x10] sm:$0xff]  }
  0x2f   :  { %1037 = vmatpush3.bf16.msra.mxu1 %v1184_v19  ;;  %v71_v59 = vpack.c.bf16 %v65_v58, %v65_v58  ;;  %v1216_v0 = vld [vmem:[%s1457_s3 + $0x20] sm:$0xff]   ;;  %v1219_v3 = vld [vmem:[%s1457_s3 + $0x8] sm:$0xff]   ;;  %v1221_v5 = vld [vmem:[%s1459_s5 + $0x38] sm:$0xff]  }
  0x30   :  { %1038 = vmatprep.subr.bf16.mxu1 %v1187_v22  ;;  %v1220_v4 = vld [vmem:[%s1457_s3] sm:$0xff]   ;;  %v1222_v6 = vld [vmem:[%s1459_s5 + $0x30] sm:$0xff]   ;;  %v1223_v7 = vld [vmem:[%s1459_s5 + $0x28] sm:$0xff]  }
  0x31   :  { %1017 = vmatpush3.bf16.msra.mxu0 %v1186_v21  ;;  %v1224_v8 = vld [vmem:[%s1459_s5 + $0x20] sm:$0xff]   ;;  %v1225_v9 = vld [vmem:[%s1459_s5 + $0x18] sm:$0xff]   ;;  %v1226_v10 = vld [vmem:[%s1459_s5 + $0x10] sm:$0xff]  }
  0x32   :  { %1018 = vmatprep.subr.bf16.mxu0 %v1189_v24  ;;  %v930_v20 = vld [vmem:[%s1456_s2] ss:$0 sm:$0xff]  ;;  %v1227_v32 = vld [vmem:[%s1459_s5 + $0x8] sm:$0xff]   ;;  %v1229_v34 = vld [vmem:[#allocation4 + $0x38] sm:$0xff]  }
  0x33   :  { %1039 = vmatpush3.bf16.msra.mxu1 %v1188_v23  ;;  %v1232_v37 = vld [vmem:[#allocation4 + $0x20] sm:$0xff]   ;;  %v1233_v38 = vld [vmem:[#allocation4 + $0x18] sm:$0xff]  }
  0x34   :  { %1040 = vmatprep.subr.bf16.mxu1 %v1191_v26  ;;  %v979_v40 = vld [vmem:[%s1458_s4] ss:$0 sm:$0xff] }
  0x35   :  { %1019 = vmatpush3.bf16.msra.mxu0 %v1190_v25  ;;  %v997_v58 = vld [vmem:[%s1462_s8] ss:$0 sm:$0xff] }
  0x36   :  { %1020 = vmatprep.subr.bf16.mxu0 %v1193_v28 }
  0x37   :  { %1041 = vmatpush3.bf16.msra.mxu1 %v1192_v27 }
  0x38   :  { %1042 = vmatprep.subr.bf16.mxu1 %v1195_v30 }
  0x39   :  { %1021 = vmatpush3.bf16.msra.mxu0 %v1194_v29 }
  0x3a   :  { %1050 = vmatprep.subr.bf16.mxu0 %v1197_v36  ;;  %v1231_v36 = vld [vmem:[#allocation4 + $0x28] sm:$0xff]  }
  0x3b   :  { %1043 = vmatpush3.bf16.msra.mxu1 %v1196_v33  ;;  %v1228_v33 = vld [vmem:[%s1459_s5] sm:$0xff]  }
  0x3c   :  { %497 = vmatmul.mubr.bf16.vlgmr.msra.gmra.mxu0 %v67_v35  ;;  %1099 = vmatprep.subr.bf16.mxu1 %v1285_v61  ;;  %v1230_v35 = vld [vmem:[#allocation4 + $0x30] sm:$0xff]  }
  0x3d   :  { %1051 = vmatpush3.bf16.msra.mxu0 %v1198_v39  ;;  %576 = vmatprep.mubr.bf16.mxu0 %v72_v53  ;;  %v1234_v39 = vld [vmem:[#allocation4 + $0x10] sm:$0xff]  }
  0x3e   :  { %537 = vmatmul.mubr.bf16.vlgmr.msra.gmra.mxu1 %v69_v41  ;;  %1052 = vmatprep.subr.bf16.mxu0 %v1199_v42 }
  0x3f   :  { %1100 = vmatpush3.bf16.msra.mxu1 %v1213_v60  ;;  %1115 = vmatprep.mubr.msk.bf16.mxu1 %vm1286_vm0, %v1285_v61 }
  0x40   :  { %1101 = vmatprep.subr.bf16.mxu1 %v1285_v61 }
  0x41   :  { %1053 = vmatpush3.bf16.msra.mxu0 %v1200_v43 }
  0x42   :  { %1054 = vmatprep.subr.bf16.mxu0 %v1201_v44 }
  0x43   :  { %1102 = vmatpush3.bf16.msra.mxu1 %v1214_v62 }
  0x44   :  { %1103 = vmatprep.subr.bf16.mxu1 %v1285_v61 }
  0x45   :  { %1055 = vmatpush3.bf16.msra.mxu0 %v1202_v45 }
  0x46   :  { %1056 = vmatprep.subr.bf16.mxu0 %v1203_v46 }
  0x47   :  { %1104 = vmatpush3.bf16.msra.mxu1 %v1215_v63 }
  0x48   :  { %1105 = vmatprep.subr.bf16.mxu1 %v1285_v61 }
  0x49   :  { %1057 = vmatpush3.bf16.msra.mxu0 %v1204_v47 }
  0x4a   :  { %1058 = vmatprep.subr.bf16.mxu0 %v1205_v48  ;;  %v1235_v48 = vld [vmem:[#allocation4 + $0x8] sm:$0xff]  }
  0x4b   :  { %1106 = vmatpush3.bf16.msra.mxu1 %v1216_v0 }
  0x4c   :  { %1107 = vmatprep.subr.bf16.mxu1 %v1285_v61 }
  0x4d   :  { %1059 = vmatpush3.bf16.msra.mxu0 %v1206_v49  ;;  %v1236_v49 = vld [vmem:[#allocation4] sm:$0xff]  }
  0x4e   :  { %1060 = vmatprep.subr.bf16.mxu0 %v1207_v50  ;;  %v988_v50 = vld [vmem:[%s1460_s6] ss:$0 sm:$0xff] }
  0x4f   :  { %1108 = vmatpush3.bf16.msra.mxu1 %v1217_v1 }
  0x50   :  { %1109 = vmatprep.subr.bf16.mxu1 %v1285_v61 }
  0x51   :  { %1061 = vmatpush3.bf16.msra.mxu0 %v1208_v52 }
  0x52   :  { %1062 = vmatprep.subr.bf16.mxu0 %v1209_v54 }
  0x53   :  { %1110 = vmatpush3.bf16.msra.mxu1 %v1218_v2 }
  0x54   :  { %1111 = vmatprep.subr.bf16.mxu1 %v1285_v61 }
  0x55   :  { %1063 = vmatpush3.bf16.msra.mxu0 %v1210_v55 }
  0x56   :  { %1064 = vmatprep.subr.bf16.mxu0 %v1211_v56 }
  0x57   :  { %1112 = vmatpush3.bf16.msra.mxu1 %v1219_v3 }
  0x58   :  { %1113 = vmatprep.subr.bf16.mxu1 %v1285_v61 }
  0x59   :  { %1065 = vmatpush3.bf16.msra.mxu0 %v1212_v57 }
  0x5a   :  { %1119 = vmatprep.subr.bf16.mxu0 %v1285_v61 }
  0x5b   :  { %1114 = vmatpush3.bf16.msra.mxu1 %v1220_v4 }
  0x5c   :  { %577 = vmatmul.mubr.bf16.vlgmr.msra.gmra.mxu0 %v71_v59  ;;  %1139 = vmatprep.subr.bf16.mxu1 %v1285_v61 }
  0x5d   :  { %1135 = vmatprep.mubr.msk.bf16.mxu0 %vm1286_vm0, %v1285_v61  ;;  %1120 = vmatpush3.bf16.msra.mxu0 %v1221_v5 }
  0x5e   :  { %1121 = vmatprep.subr.bf16.mxu0 %v1285_v61 }
  0x61   :  { %1122 = vmatpush3.bf16.msra.mxu0 %v1222_v6 }
  0x62   :  { %1123 = vmatprep.subr.bf16.mxu0 %v1285_v61 }
  0x65   :  { %1124 = vmatpush3.bf16.msra.mxu0 %v1223_v7 }
  0x66   :  { %1125 = vmatprep.subr.bf16.mxu0 %v1285_v61 }
  0x69   :  { %1126 = vmatpush3.bf16.msra.mxu0 %v1224_v8 }
  0x6a   :  { %1127 = vmatprep.subr.bf16.mxu0 %v1285_v61 }
  0x6d   :  { %1128 = vmatpush3.bf16.msra.mxu0 %v1225_v9 }
  0x6e   :  { %1129 = vmatprep.subr.bf16.mxu0 %v1285_v61 }
  0x71   :  { %1130 = vmatpush3.bf16.msra.mxu0 %v1226_v10 }
  0x72   :  { %1131 = vmatprep.subr.bf16.mxu0 %v1285_v61 }
  0x75   :  { %1132 = vmatpush3.bf16.msra.mxu0 %v1227_v32 }
  0x76   :  { %1133 = vmatprep.subr.bf16.mxu0 %v1285_v61 }
  0x79   :  { %1134 = vmatpush3.bf16.msra.mxu0 %v1228_v33 }
  0xfc   :  { %v1022_v11 = vpop.f32.mrf.mxu0 }
  0xfe   :  { %v1023_v12 = vpop.f32.mrf.mxu0  ;;  %v1044_v13 = vpop.f32.mrf.mxu1 }
  0xff   :  { %v1024_v19 = vadd.f32 %v1023_v12, %v1022_v11 }
 0x100   :  { %v1025_v14 = vpop.f32.mrf.mxu0  ;;  %v1045_v15 = vpop.f32.mrf.mxu1 }
 0x101   :  { %v499_v21 = vadd.f32 %v1024_v19, %v930_v20  ;;  %v1046_v22 = vadd.f32 %v1045_v15, %v1044_v13 }
 0x102   :  { %v1026_v16 = vpop.f32.mrf.mxu0  ;;  %v1047_v17 = vpop.f32.mrf.mxu1 }
 0x103   :  { %v539_v25 = vadd.f32 %v1046_v22, %v499_v21 }
 0x104   :  { %v1048_v18 = vpop.f32.mrf.mxu1 }
 0x11c   :  { %v1066_v23 = vpop.f32.mrf.mxu0 }
 0x11e   :  { %v1067_v24 = vpop.f32.mrf.mxu0 }
 0x11f   :  { %v1068_v26 = vadd.f32 %v1067_v24, %v1066_v23 }
 0x120   :  { %v1069_v27 = vpop.f32.mrf.mxu0 }
 0x121   :  { %v579_v28 = vadd.f32 %v1068_v26, %v539_v25 }
 0x122   :  { %v1070_v29 = vpop.f32.mrf.mxu0 }
 0x123   :  { %v584_v30 = vmax.f32 %v579_v28, 0.0 }
 0x125   :  { %v585_v31 = vpack.c.bf16 %v584_v30, %v584_v30 }
 0x127   :  { %1116 = vmatmul.mubr.bf16.vlgmr.msra.gmra.mxu1 %v585_v31 }
 0x128   :  { %1155 = vmatprep.mubr.msk.bf16.mxu1 %vm1286_vm0, %v1285_v61  ;;  %1140 = vmatpush3.bf16.msra.mxu1 %v1229_v34 }
 0x129   :  { %1141 = vmatprep.subr.bf16.mxu1 %v1285_v61 }
 0x12c   :  { %1142 = vmatpush3.bf16.msra.mxu1 %v1230_v35 }
 0x12d   :  { %1143 = vmatprep.subr.bf16.mxu1 %v1285_v61 }
 0x130   :  { %1144 = vmatpush3.bf16.msra.mxu1 %v1231_v36 }
 0x131   :  { %1145 = vmatprep.subr.bf16.mxu1 %v1285_v61 }
 0x134   :  { %1146 = vmatpush3.bf16.msra.mxu1 %v1232_v37 }
 0x135   :  { %1147 = vmatprep.subr.bf16.mxu1 %v1285_v61 }
 0x138   :  { %1148 = vmatpush3.bf16.msra.mxu1 %v1233_v38 }
 0x139   :  { %1149 = vmatprep.subr.bf16.mxu1 %v1285_v61 }
 0x13c   :  { %1150 = vmatpush3.bf16.msra.mxu1 %v1234_v39 }
 0x13d   :  { %1151 = vmatprep.subr.bf16.mxu1 %v1285_v61 }
 0x140   :  { %1152 = vmatpush3.bf16.msra.mxu1 %v1235_v48 }
 0x141   :  { %1153 = vmatprep.subr.bf16.mxu1 %v1285_v61 }
 0x144   :  { %1154 = vmatpush3.bf16.msra.mxu1 %v1236_v49 }
 0x1e7   :  { %v691_v41 = vpop.f32.mrf.mxu1 }
 0x1e8   :  { %v692_v42 = vadd.f32 %v979_v40, %v691_v41 }
 0x1e9   :  { %v1117_v43 = vpop.f32.mrf.mxu1 }
 0x1ea   :  { %v697_v44 = vmax.f32 %v692_v42, 0.0 }
 0x1eb   :  { %v694_v45 = vpop.f32.mrf.mxu1 }
 0x1ec   :  { %v698_v46 = vpack.c.bf16 %v697_v44, %v697_v44 }
 0x1ed   :  { %v1118_v47 = vpop.f32.mrf.mxu1 }
 0x1ee   :  { %1136 = vmatmul.mubr.bf16.vlgmr.msra.gmra.mxu0 %v698_v46 }
 0x2ae   :  { %v804_v51 = vpop.f32.mrf.mxu0 }
 0x2af   :  { %v805_v52 = vadd.f32 %v988_v50, %v804_v51 }
 0x2b0   :  { %v1137_v53 = vpop.f32.mrf.mxu0 }
 0x2b1   :  { %v810_v54 = vmax.f32 %v805_v52, 0.0 }
 0x2b2   :  { %v807_v55 = vpop.f32.mrf.mxu0 }
 0x2b3   :  { %v811_v56 = vpack.c.bf16 %v810_v54, %v810_v54 }
 0x2b4   :  { %v1138_v57 = vpop.f32.mrf.mxu0 }
 0x2b5   :  { %1156 = vmatmul.mubr.bf16.vlgmr.msra.gmra.mxu1 %v811_v56 }
 0x375   :  { %v917_v59 = vpop.f32.mrf.mxu1 }
 0x376   :  { %v918_v60 = vadd.f32 %v997_v58, %v917_v59 }
 0x377   :  { %v1157_v61 = vpop.f32.mrf.mxu1 }
 0x378   :  { %923 = vst [vmem:[%s1463_s9] sm:$0xff] %v918_v60 }
 0x379   :  { %v920_v62 = vpop.f32.mrf.mxu1 }
 0x37b   :  { %v1158_v63 = vpop.f32.mrf.mxu1 }
 0x37c   :  { %928 = vsyncpa [#allocation3], 1 }
 0x37d   :  { %929 = vsyncpa [#allocation5], 1 }

</bundles_post_ra>
